<compile_context>
chip_gen: v7x
topology: tpu7x:2x2x1
jax: 0.10.0
libtpu: 0.0.40
codegen_flags: <defaults>
</compile_context>

<pallas_src>
import functools

import jax
import jax.numpy as jnp
from jax.experimental import pallas as pl
from jax.experimental.pallas import tpu as pltpu


def _mixup_kernel(lam_ref, x_ref, prev_ref, o_ref):
    """lam_ref:  (2,) f32 in SMEM (lam0 >= lam1, lam0 + lam1 = 1).
    x_ref:    (TB, rows, lanes) current block of images (auto-pipelined VMEM).
    prev_ref: (1, rows, lanes) predecessor of the block's first image
              (auto-pipelined VMEM; index_map does the roll-by-1 wrap).
    o_ref:    (TB, rows, lanes) mixed-image output block.
    """
    # Scalar reads first (cheap SMEM loads, no DMA wait in this kernel).
    lam0 = lam_ref[0]
    lam1 = lam_ref[1]

    tb = x_ref.shape[0]  # images per block (static)

    # First image of the block mixes with the predecessor image fetched via
    # the prev_ref index_map (handles both the in-batch roll and the wrap).
    o_ref[0:1] = (lam0 * x_ref[0:1].astype(jnp.float32)
                  + lam1 * prev_ref[...].astype(jnp.float32)).astype(o_ref.dtype)

    # Remaining images mix with their in-block predecessor.  Operands are
    # sliced straight from the ref (no full-block f32 materialization).
    if tb > 1:
        o_ref[pl.ds(1, tb - 1)] = (
            lam0 * x_ref[pl.ds(1, tb - 1)].astype(jnp.float32)
            + lam1 * x_ref[pl.ds(0, tb - 1)].astype(jnp.float32)
        ).astype(o_ref.dtype)


def _vmem_budget():
    """Generation-specific (max_block_bytes, vmem_limit_cap)."""
    try:
        kind = jax.devices()[0].device_kind.lower()
    except Exception:  # pragma: no cover - defensive default
        kind = ""
    if "v7" in kind:
        # v7x: only 64 MiB physical VMEM per TensorCore -- leave headroom.
        return 4 << 20, 48 << 20
    # v5e / v6e: 128 MiB physical VMEM; larger blocks amortize per-step cost.
    return 12 << 20, 64 << 20


@functools.partial(jax.jit, static_argnames=("num_classes",))
def random_mixup(batch, target, lam, *, num_classes):
    """Pallas equivalent of RandomMixup.forward.

    batch:  (B, C, H, W) float
    target: (B,) int32 class indices
    lam:    (2,) float32, sorted descending, sums to 1 (Dirichlet([a,a]) sample)
    returns (mixed_batch (B,C,H,W), mixed_target (B, num_classes))
    """
    B, C, H, W = batch.shape
    P = C * H * W

    # Lane-dense layout.  When P is a multiple of 128 (e.g. 3*224*224) each
    # image becomes a (rows, 128) slab.  Otherwise keep the whole image on the
    # lane axis: block last-two dims equal the full array dims, which is legal
    # and avoids any wrapper-side jnp.pad / slice HBM round trip.
    if P % 128 == 0:
        rows, lanes = P // 128, 128
    else:
        rows, lanes = 1, P
    x = batch.reshape(B, rows, lanes)

    itemsize = jnp.dtype(batch.dtype).itemsize
    # VMEM footprint per image (sublane dim padded to 8, lane dim to 128).
    img_vmem = (-(-rows // 8) * 8) * (-(-lanes // 128) * 128) * itemsize

    max_block_bytes, vmem_cap = _vmem_budget()
    tb = max(1, min(B, max_block_bytes // max(img_vmem, 1)))
    block_vmem = tb * img_vmem
    # 2x input buffers + 2x output buffers + 2x predecessor buffers + headroom.
    vmem_limit = int(min(max(4 * block_vmem + 2 * img_vmem + (4 << 20), 32 << 20),
                         vmem_cap))

    block = (tb, rows, lanes)
    grid = (pl.cdiv(B, tb),)  # tail block (if any) is masked by Pallas

    # Predecessor of the first image of block i: image (i*tb - 1) mod B.
    def prev_index_map(i, tb=tb, B=B):
        return ((i * tb + B - 1) % B, 0, 0)

    out_img = pl.pallas_call(
        _mixup_kernel,
        grid=grid,
        in_specs=[
            pl.BlockSpec(memory_space=pltpu.MemorySpace.SMEM),   # lam (scalars)
            pl.BlockSpec(block, lambda i: (i, 0, 0)),            # x, pipelined
            pl.BlockSpec((1, rows, lanes), prev_index_map),      # rolled-by-1 image
        ],
        out_specs=pl.BlockSpec(block, lambda i: (i, 0, 0)),
        out_shape=jax.ShapeDtypeStruct((B, rows, lanes), batch.dtype),
        compiler_params=pltpu.CompilerParams(
            # Every grid step is independent now -> megacore-shardable on v7x.
            dimension_semantics=("parallel",),
            vmem_limit_bytes=vmem_limit,
        ),
        cost_estimate=pl.CostEstimate(
            flops=3 * B * rows * lanes,
            transcendentals=0,
            bytes_accessed=(2 * B + pl.cdiv(B, tb)) * rows * lanes * itemsize,
        ),
    )(lam, x, x)

    mixed_batch = out_img.reshape(B, C, H, W)

    # Target mix is tiny (B x num_classes): plain JAX, no kernel output needed.
    onehot = jax.nn.one_hot(target, num_classes, dtype=batch.dtype)
    mixed_target = (lam[0] * onehot
                    + lam[1] * jnp.roll(onehot, 1, axis=0)).astype(batch.dtype)

    return mixed_batch, mixed_target


def sample_lambda(key, alpha):
    """Dirichlet([alpha, alpha]) sample, sorted descending (matches the module)."""
    l = jax.random.beta(key, alpha, alpha)
    lam0 = jnp.maximum(l, 1.0 - l)
    return jnp.stack([lam0, 1.0 - lam0]).astype(jnp.float32)


if __name__ == "__main__":
    num_classes = 10
    alpha = 1.0
    B, C, H, W = 2, 4, 16, 16

    key = jax.random.PRNGKey(0)
    k_img, k_tgt, k_lam = jax.random.split(key, 3)

    batch = jax.random.normal(k_img, (B, C, H, W), dtype=jnp.float32)
    # Note: PyTorch requires int64 targets; int32 is semantically identical here.
    target = jax.random.randint(k_tgt, (B,), 0, num_classes, dtype=jnp.int32)
    lam = sample_lambda(k_lam, alpha)

    mixed_batch, mixed_target = random_mixup(
        batch, target, lam, num_classes=num_classes)
    jax.block_until_ready((mixed_batch, mixed_target))

    # Pure-JAX reference (same lambda) for a correctness sanity check.
    onehot = jax.nn.one_hot(target, num_classes, dtype=batch.dtype)
    ref_batch = lam[0] * batch + lam[1] * jnp.roll(batch, 1, axis=0)
    ref_target = lam[0] * onehot + lam[1] * jnp.roll(onehot, 1, axis=0)

    assert mixed_batch.shape == (B, C, H, W)
    assert mixed_target.shape == (B, num_classes)
    assert jnp.allclose(mixed_batch, ref_batch, atol=1e-6)
    assert jnp.allclose(mixed_target, ref_target, atol=1e-6)

    # TODO(synk): the module's `p` (apply-probability) is unused in the
    # reference forward ("always mixed up"), so it is intentionally omitted.
    print("KERNEL_OK")
</pallas_src>

<mosaic_0001>
module attributes {stable_mosaic.version = 11 : i64} {
  func.func @_mixup_kernel(%arg0: i32, %arg1: memref<2xf32, #tpu.memory_space<smem>>, %arg2: memref<2x8x128xf32, #tpu.memory_space<vmem>>, %arg3: memref<1x8x128xf32, #tpu.memory_space<vmem>>, %arg4: memref<2x8x128xf32, #tpu.memory_space<vmem>>) attributes {dimension_semantics = [#tpu.dimension_semantics<parallel>], iteration_bounds = array<i64: 1>, scalar_prefetch = 0 : i64, scratch_operands = 0 : i64, tpu.core_type = #tpu.core_type<tc>, window_params = [{transform_indices = @transform_0, window_bounds = array<i64: 2>}, {transform_indices = @transform_1, window_bounds = array<i64: 2, 8, 128>}, {transform_indices = @transform_2, window_bounds = array<i64: 1, 8, 128>}, {transform_indices = @transform_3, window_bounds = array<i64: 2, 8, 128>}]} {
    %c0 = arith.constant 0 : index
    %0 = memref.load %arg1[%c0] : memref<2xf32, #tpu.memory_space<smem>>
    %c1 = arith.constant 1 : index
    %1 = memref.load %arg1[%c1] : memref<2xf32, #tpu.memory_space<smem>>
    %c0_0 = arith.constant 0 : index
    %c0_1 = arith.constant 0 : index
    %c0_2 = arith.constant 0 : index
    %2 = vector.load %arg2[%c0_0, %c0_1, %c0_2] : memref<2x8x128xf32, #tpu.memory_space<vmem>>, vector<1x8x128xf32>
    %3 = vector.broadcast %0 : f32 to vector<1x8x128xf32>
    %4 = arith.mulf %3, %2 : vector<1x8x128xf32>
    %c0_3 = arith.constant 0 : index
    %c0_4 = arith.constant 0 : index
    %c0_5 = arith.constant 0 : index
    %5 = vector.load %arg3[%c0_3, %c0_4, %c0_5] : memref<1x8x128xf32, #tpu.memory_space<vmem>>, vector<1x8x128xf32>
    %6 = vector.broadcast %1 : f32 to vector<1x8x128xf32>
    %7 = arith.mulf %6, %5 : vector<1x8x128xf32>
    %8 = arith.addf %4, %7 : vector<1x8x128xf32>
    %c0_6 = arith.constant 0 : index
    %c0_7 = arith.constant 0 : index
    %c0_8 = arith.constant 0 : index
    %9 = vector.load %arg4[%c0_6, %c0_7, %c0_8] : memref<2x8x128xf32, #tpu.memory_space<vmem>>, vector<1x8x128xf32>
    tpu.vector_store %arg4[%c0_6, %c0_7, %c0_8], %8 {strides = array<i32>} : memref<2x8x128xf32, #tpu.memory_space<vmem>>, vector<1x8x128xf32>,
    %c1_9 = arith.constant 1 : index
    %c0_10 = arith.constant 0 : index
    %c0_11 = arith.constant 0 : index
    %10 = vector.load %arg2[%c1_9, %c0_10, %c0_11] : memref<2x8x128xf32, #tpu.memory_space<vmem>>, vector<1x8x128xf32>
    %11 = vector.broadcast %0 : f32 to vector<1x8x128xf32>
    %12 = arith.mulf %11, %10 : vector<1x8x128xf32>
    %c0_12 = arith.constant 0 : index
    %c0_13 = arith.constant 0 : index
    %c0_14 = arith.constant 0 : index
    %13 = vector.load %arg2[%c0_12, %c0_13, %c0_14] : memref<2x8x128xf32, #tpu.memory_space<vmem>>, vector<1x8x128xf32>
    %14 = vector.broadcast %1 : f32 to vector<1x8x128xf32>
    %15 = arith.mulf %14, %13 : vector<1x8x128xf32>
    %16 = arith.addf %12, %15 : vector<1x8x128xf32>
    %c1_15 = arith.constant 1 : index
    %c0_16 = arith.constant 0 : index
    %c0_17 = arith.constant 0 : index
    %17 = vector.load %arg4[%c1_15, %c0_16, %c0_17] : memref<2x8x128xf32, #tpu.memory_space<vmem>>, vector<1x8x128xf32>
    tpu.vector_store %arg4[%c1_15, %c0_16, %c0_17], %16 {strides = array<i32>} : memref<2x8x128xf32, #tpu.memory_space<vmem>>, vector<1x8x128xf32>,
    return
  }
  func.func @transform_0(%arg0: i32) -> i32 {
    %c0_i32 = arith.constant 0 : i32
    %c0_i32_0 = arith.constant 0 : i32
    return %c0_i32 : i32
  }
  func.func @transform_1(%arg0: i32) -> (i32, i32, i32) {
    %c0_i32 = arith.constant 0 : i32
    %c0_i32_0 = arith.constant 0 : i32
    %c0_i32_1 = arith.constant 0 : i32
    return %arg0, %c0_i32, %c0_i32_0 : i32, i32, i32
  }
  func.func @transform_2(%arg0: i32) -> (i32, i32, i32) {
    %c2_i32 = arith.constant 2 : i32
    %0 = arith.muli %arg0, %c2_i32 : i32
    %c2_i32_0 = arith.constant 2 : i32
    %1 = arith.addi %0, %c2_i32_0 : i32
    %c1_i32 = arith.constant 1 : i32
    %2 = arith.subi %1, %c1_i32 : i32
    %c2_i32_1 = arith.constant 2 : i32
    %c0_i32 = arith.constant 0 : i32
    %3 = arith.cmpi eq, %c2_i32_1, %c0_i32 : i32
    %c1_i32_2 = arith.constant 1 : i32
    %4 = arith.select %3, %c1_i32_2, %c2_i32_1 : i32
    %5 = arith.remsi %2, %4 : i32
    %c0_i32_3 = arith.constant 0 : i32
    %6 = arith.cmpi ne, %5, %c0_i32_3 : i32
    %c0_i32_4 = arith.constant 0 : i32
    %7 = arith.cmpi slt, %5, %c0_i32_4 : i32
    %c0_i32_5 = arith.constant 0 : i32
    %8 = arith.cmpi slt, %4, %c0_i32_5 : i32
    %9 = arith.xori %7, %8 : i1
    %10 = arith.andi %9, %6 : i1
    %11 = arith.addi %5, %4 : i32
    %12 = arith.select %10, %11, %5 : i32
    %c0_i32_6 = arith.constant 0 : i32
    %c0_i32_7 = arith.constant 0 : i32
    %c0_i32_8 = arith.constant 0 : i32
    return %12, %c0_i32_6, %c0_i32_7 : i32, i32, i32
  }
  func.func @transform_3(%arg0: i32) -> (i32, i32, i32) {
    %c0_i32 = arith.constant 0 : i32
    %c0_i32_0 = arith.constant 0 : i32
    %c0_i32_1 = arith.constant 0 : i32
    return %arg0, %c0_i32, %c0_i32_0 : i32, i32, i32
  }
}

</mosaic_0001>

<bundles_post_ra>
// kernel: random_mixup.1
= control target key start
LH: loop header
LB: loop body
LE: loop exit
PB: predicated region body
PF: predicated region fallthrough
CT: control target
= control target key end

     0   :  { %8 = vsyncpa [#allocation3], 0  ;;  %s196_s0 = inlined_call_operand.vmem [shape: f32[2], index: 0, kind: input, shape index: {}]   ;;  %s197_s1 = inlined_call_operand.vmem [shape: f32[2,8,128], index: 1, kind: input, shape index: {}, may-alias: {1,2}]   ;;  %s198_s2 = inlined_call_operand.vmem [shape: f32[2,8,128], index: 2, kind: input, shape index: {}, may-alias: {1,2}]   ;;  %s199_s3 = inlined_call_operand.vmem [shape: f32[2,8,128], index: 3, kind: output, shape index: {}]  }
   0x1   :  { %s15_s14 = sshll.u32 %s196_s0, 4  ;;  %s16_s14 = int_to_ptr.vmem [resolvable:$true] %s15_s14 }
   0x2   :  { %s143_s15 = scalar_lea.vmem %s16_s14, 16  ;;  %p148_p1 = scmp.lt.s32.totalorder %s16_s14, %s16_s14 }
   0x3   :  { %p144_p0 = scmp.ne.s32.totalorder %s16_s14, %s143_s15  ;;  %p149_p2 = scmp.lt.s32.totalorder %s143_s15, %s143_s15 }
   0x5   :  { %p150_p3 = por %p149_p2, %p148_p1 }
   0x7   :  { %p151_p4 = pnand %p150_p3, %p144_p0 }
   0x9   :  { %154 = shalt.err (!%p151_p4)
}
   0xa   :  { %s157_s16 = smov [#allocation2]  }
   0xb   :  { %18 = dma.vmem_to_smem %s16_s14, 16, %s157_s16, [#allocation3]  }
   0xc   :  { %155 = dma.done.wait [#allocation3], 16  }
   0xd   :  { %156 = vsyncadd [#allocation3], 4294967280 }
   0xe   :  { %58 = sfence }
   0xf   :  { %s109_s17 = sld [smem:[#allocation2]]  ;;  %s138_s18 = sld [smem:[#allocation2 + $0x1]]  ;;  %v111_v0 = vld [vmem:[%s197_s1] sm:$0xff]  ;;  %v139_v1 = vld [vmem:[%s198_s2 + $0x8] sm:$0xff] }
  0x10   :  { %v140_v2 = vld [vmem:[%s197_s1 + $0x8] sm:$0xff] }
  0x15   :  { %v112_v3 = vstv %s109_s17  ;;  %v115_v4 = vstv %s138_s18 }
  0x16   :  { %v113_v5 = vmul.f32 %v112_v3, %v111_v0  ;;  %v116_v6 = vmul.f32 %v139_v1, %v115_v4  ;;  %v121_v7 = vmul.f32 %v140_v2, %v112_v3  ;;  %v123_v8 = vmul.f32 %v115_v4, %v111_v0 }
  0x18   :  { %v117_v9 = vadd.f32 %v116_v6, %v113_v5  ;;  %v124_v10 = vadd.f32 %v123_v8, %v121_v7 }
  0x1a   :  { %118 = vst [vmem:[%s199_s3] sm:$0xff] %v117_v9  ;;  %141 = vst [vmem:[%s199_s3 + $0x8] sm:$0xff] %v124_v10 }
  0x1b   :  { %131 = vsyncpa [#allocation3], 1 }

</bundles_post_ra>
